<compile_context>
chip_gen: v7x
topology: tpu7x:2x2x1
jax: 0.10.0
libtpu: 0.0.40
codegen_flags: <defaults>
</compile_context>

<pallas_src>
import jax
import jax.numpy as jnp
from jax.experimental import pallas as pl
from jax.experimental.pallas import tpu as pltpu

KSIZE = 3  # TCN kernel_size (Model uses kernel_size=3)


# --------------------------- Fused forward kernel ---------------------------
def _build_fused_kernel(offsets, block_meta, B, L):
    """offsets: name -> (row_off, rows, cols) into the packed param slab.
    block_meta: tuple of (dilation:int, has_downsample:bool) per TCN block."""
    shifts = sorted({s for d, _ in block_meta for s in (d, 2 * d)})

    def kernel(x_ref, w_ref, o_ref):
        # ---- parameter carving: static slices into the packed slab ----
        def getp(name):
            off, r, c = offsets[name]
            return w_ref[off:off + r, :c]

        def mmul(a, b):
            return jnp.dot(a, b, preferred_element_type=jnp.float32)

        # ---- causal masks built in-kernel (no extra DMA) ----
        # lane index t' = b*L + l ; l = t' mod L is the position within a sequence.
        lane = jax.lax.broadcasted_iota(jnp.int32, (1, B * L), 1)
        l_idx = lane % L
        fmask = {s: (l_idx >= s).astype(jnp.float32) for s in shifts}

        def shifted(v, s):
            # v[:, t'-s], zero-filled causally per sequence (mask also kills the
            # wrap-around / cross-batch lanes of the roll).
            return pltpu.roll(v, shift=s, axis=1) * fmask[s]

        def conv(v, prefix, d):
            # Dilated causal conv (k=0 -> shift 2d, k=1 -> shift d, k=2 -> shift 0)
            # as three accumulated dots: no channel concat / lane relayout.
            out = mmul(getp(prefix + "_k0"), shifted(v, 2 * d))
            out = out + mmul(getp(prefix + "_k1"), shifted(v, d))
            out = out + mmul(getp(prefix + "_k2"), v)
            return out + getp(prefix + "_b")

        # in_layer (Linear input_dim -> emb_dim), channels-on-sublanes layout
        h = mmul(getp("in_w"), x_ref[...]) + getp("in_b")          # (emb, B*L)

        # TCN blocks: conv+chomp+ReLU (+dropout=identity) x2, residual, ReLU
        for i, (d, has_ds) in enumerate(block_meta):
            a = jnp.maximum(conv(h, f"b{i}_c1", d), 0.0)
            g = jnp.maximum(conv(a, f"b{i}_c2", d), 0.0)
            if has_ds:
                res = mmul(getp(f"b{i}_wd"), h) + getp(f"b{i}_bd")
            else:
                res = h                                            # identity residual
            h = jnp.maximum(g + res, 0.0)

        # decoder (Linear 3*input_dim -> output_dim)
        dec = mmul(getp("dec_w"), h) + getp("dec_b")               # (out_dim, B*L)

        # out_layer fused into ONE matmul via block-diagonal weight:
        #   out[o, b*P + p] = sum_l out_wt[p, l] * dec[o, b*L + l] + out_b[p]
        o_ref[...] = mmul(dec, getp("out_blk")) + getp("out_bias")  # (out_dim, B*P)

    return kernel


# ------------------------------ Param packing -------------------------------
def pack_params(p, B, L):
    """Pack all parameters into one (rows, 128) f32 slab, 8-row aligned entries."""
    names, arrays = [], []

    def add(name, a):
        names.append(name)
        arrays.append(jnp.asarray(a, jnp.float32))

    add("in_w", p["in_w"])                              # (emb, M)
    add("in_b", p["in_b"].reshape(-1, 1))               # (emb, 1)
    for i, blk in enumerate(p["blocks"]):
        for k in range(KSIZE):
            add(f"b{i}_c1_k{k}", blk["w1"][:, :, k])    # (Cout, Cin)
        add(f"b{i}_c1_b", blk["b1"].reshape(-1, 1))
        for k in range(KSIZE):
            add(f"b{i}_c2_k{k}", blk["w2"][:, :, k])    # (Cout, Cout)
        add(f"b{i}_c2_b", blk["b2"].reshape(-1, 1))
        if "wd" in blk:
            add(f"b{i}_wd", blk["wd"])                  # (Cout, Cin)
            add(f"b{i}_bd", blk["bd"].reshape(-1, 1))
    add("dec_w", p["dec_w"])                            # (out_dim, 3M)
    add("dec_b", p["dec_b"].reshape(-1, 1))

    # Block-diagonal out_layer weight (B*L, B*P) and tiled bias row (1, B*P).
    P_len = p["out_w"].shape[0]
    out_blk = jnp.zeros((B * L, B * P_len), jnp.float32)
    for b in range(B):
        out_blk = out_blk.at[b * L:(b + 1) * L, b * P_len:(b + 1) * P_len].set(p["out_w"].T)
    add("out_blk", out_blk)
    add("out_bias", jnp.tile(p["out_b"].reshape(1, -1), (1, B)))

    LANES = 128
    offsets, pieces, row = {}, [], 0
    for name, a in zip(names, arrays):
        r, c = a.shape
        assert c <= LANES, (name, a.shape)
        rp = ((r + 7) // 8) * 8
        piece = jnp.zeros((rp, LANES), jnp.float32).at[:r, :c].set(a)
        pieces.append(piece)
        offsets[name] = (row, r, c)
        row += rp
    slab = jnp.concatenate(pieces, axis=0)
    block_meta = tuple((blk["dil"], "wd" in blk) for blk in p["blocks"])
    return slab, offsets, block_meta


# ---------------------------------- Forward ----------------------------------
def model_forward(x_enc, slab, offsets, block_meta, pred_len, out_dim):
    """gl == 0 path of Model.forward; x_enc: (B, L, input_dim) float32."""
    B, L, M = x_enc.shape
    xT = x_enc.reshape(B * L, M).T                      # (M, B*L): channels on sublanes

    vmem = pltpu.MemorySpace.VMEM
    out = pl.pallas_call(
        _build_fused_kernel(offsets, block_meta, B, L),
        out_shape=jax.ShapeDtypeStruct((out_dim, B * pred_len), jnp.float32),
        in_specs=[pl.BlockSpec(memory_space=vmem)] * 2,
        out_specs=pl.BlockSpec(memory_space=vmem),
    )(xT, slab)
    # (out_dim, B*P) -> (B, P, out_dim)  (layout plumbing in the wrapper)
    return out.reshape(out_dim, B, pred_len).transpose(1, 2, 0)


# -------------------------------- Parameters --------------------------------
def init_params(key, input_dim, output_dim, emb_dim, pred_len, seq_len, tcn_layers):
    keys = iter(jax.random.split(key, 64))
    nrm = lambda shape, scale: scale * jax.random.normal(next(keys), shape, jnp.float32)

    p = {"in_w": nrm((emb_dim, input_dim), 0.1),        # PyTorch Linear (out, in)
         "in_b": nrm((emb_dim,), 0.1)}

    channels = (tcn_layers - 1) * [emb_dim] + [3 * input_dim]
    blocks, c_prev = [], emb_dim
    for i, c_out in enumerate(channels):
        blk = {
            "dil": 2 ** i,
            "w1": nrm((c_out, c_prev, KSIZE), 0.01),    # Conv1d weight (Cout, Cin, K)
            "b1": nrm((c_out,), 0.1),
            "w2": nrm((c_out, c_out, KSIZE), 0.01),
            "b2": nrm((c_out,), 0.1),
        }
        if c_prev != c_out:                             # downsample 1x1 conv
            blk["wd"] = nrm((c_out, c_prev), 0.01)
            blk["bd"] = nrm((c_out,), 0.1)
        blocks.append(blk)
        c_prev = c_out
    p["blocks"] = blocks

    p["dec_w"] = nrm((output_dim, 3 * input_dim), 0.1)
    p["dec_b"] = nrm((output_dim,), 0.1)
    p["out_w"] = nrm((pred_len, seq_len), 0.1)          # PyTorch-native (out, in)
    p["out_b"] = nrm((pred_len,), 0.1)
    return p


# --------------------------- Pure-JAX reference -----------------------------
def _ref_forward(x_enc, p):
    B, L, _ = x_enc.shape
    h = jnp.einsum("blm,em->ble", x_enc, p["in_w"], precision="highest") + p["in_b"]

    for blk in p["blocks"]:
        d = blk["dil"]

        def conv(v, w, b):                              # w: (Cout, Cin, K)
            out = jnp.zeros(v.shape[:2] + (w.shape[0],), jnp.float32) + b
            for k in range(KSIZE):
                s = (KSIZE - 1 - k) * d
                vs = jnp.pad(v, ((0, 0), (s, 0), (0, 0)))[:, :L, :]
                out = out + jnp.einsum("blc,oc->blo", vs, w[:, :, k], precision="highest")
            return out

        a = jax.nn.relu(conv(h, blk["w1"], blk["b1"]))
        g = jax.nn.relu(conv(a, blk["w2"], blk["b2"]))
        if "wd" in blk:
            res = jnp.einsum("blc,oc->blo", h, blk["wd"], precision="highest") + blk["bd"]
        else:
            res = h
        h = jax.nn.relu(g + res)

    dec = jnp.einsum("blc,oc->blo", h, p["dec_w"], precision="highest") + p["dec_b"]
    out = jnp.einsum("pl,blo->bpo", p["out_w"], dec, precision="highest") \
        + p["out_b"][None, :, None]
    return out


# ----------------------------------- Main ------------------------------------
if __name__ == "__main__":
    # Model(input_dim=4, output_dim=4, emb_dim=8, pred_len=8, seq_len=16,
    #       tcn_layers=2, dropout=0.2, gl=0)
    B, L, M = 2, 16, 4
    emb_dim, pred_len, output_dim, tcn_layers = 8, 8, 4, 2

    key = jax.random.PRNGKey(0)
    kx, kp = jax.random.split(key)
    x_enc = jax.random.normal(kx, (B, L, M), jnp.float32)
    params = init_params(kp, M, output_dim, emb_dim, pred_len, L, tcn_layers)
    slab, offsets, block_meta = pack_params(params, B, L)

    out = jax.block_until_ready(
        model_forward(x_enc, slab, offsets, block_meta, pred_len, output_dim))
    assert out.shape == (B, pred_len, output_dim), out.shape

    ref = jax.block_until_ready(_ref_forward(x_enc, params))
    if not jnp.allclose(out, ref, rtol=1e-3, atol=1e-3):
        raise AssertionError("Pallas output does not match pure-JAX reference")

    print("KERNEL_OK")
</pallas_src>

<mosaic_0001>
module attributes {stable_mosaic.version = 11 : i64} {
  func.func @kernel(%arg0: memref<4x32xf32, #tpu.memory_space<vmem>>, %arg1: memref<296x128xf32, #tpu.memory_space<vmem>>, %arg2: memref<4x16xf32, #tpu.memory_space<vmem>>) attributes {dimension_semantics = [], scalar_prefetch = 0 : i64, scratch_operands = 0 : i64, tpu.core_type = #tpu.core_type<tc>} {
    %0 = tpu.iota {dimensions = array<i32: 1>} : vector<1x32xi32>
    %c16_i32 = arith.constant 16 : i32
    %c0_i32 = arith.constant 0 : i32
    %1 = arith.cmpi eq, %c16_i32, %c0_i32 : i32
    %c1_i32 = arith.constant 1 : i32
    %2 = arith.select %1, %c1_i32, %c16_i32 : i32
    %3 = vector.broadcast %2 : i32 to vector<1x32xi32>
    %4 = arith.remsi %0, %3 : vector<1x32xi32>
    %c0_i32_0 = arith.constant 0 : i32
    %5 = vector.broadcast %c0_i32_0 : i32 to vector<1x32xi32>
    %6 = arith.cmpi ne, %4, %5 : vector<1x32xi32>
    %c0_i32_1 = arith.constant 0 : i32
    %7 = vector.broadcast %c0_i32_1 : i32 to vector<1x32xi32>
    %8 = arith.cmpi slt, %4, %7 : vector<1x32xi32>
    %c0_i32_2 = arith.constant 0 : i32
    %9 = arith.cmpi slt, %2, %c0_i32_2 : i32
    %10 = vector.broadcast %9 : i1 to vector<1x32xi1>
    %11 = vector.broadcast %10 : vector<1x32xi1> to vector<1x32xi1>
    %12 = arith.xori %8, %11 : vector<1x32xi1>
    %13 = arith.andi %12, %6 : vector<1x32xi1>
    %14 = vector.broadcast %2 : i32 to vector<1x32xi32>
    %15 = arith.addi %4, %14 : vector<1x32xi32>
    %16 = arith.select %13, %15, %4 : vector<1x32xi1>, vector<1x32xi32>
    %c1_i32_3 = arith.constant 1 : i32
    %17 = vector.broadcast %c1_i32_3 : i32 to vector<1x32xi32>
    %18 = arith.cmpi sge, %16, %17 : vector<1x32xi32>
    %19 = arith.extui %18 : vector<1x32xi1> to vector<1x32xi32>
    %20 = arith.sitofp %19 : vector<1x32xi32> to vector<1x32xf32>
    %c2_i32 = arith.constant 2 : i32
    %21 = vector.broadcast %c2_i32 : i32 to vector<1x32xi32>
    %22 = arith.cmpi sge, %16, %21 : vector<1x32xi32>
    %23 = arith.extui %22 : vector<1x32xi1> to vector<1x32xi32>
    %24 = arith.sitofp %23 : vector<1x32xi32> to vector<1x32xf32>
    %c4_i32 = arith.constant 4 : i32
    %25 = vector.broadcast %c4_i32 : i32 to vector<1x32xi32>
    %26 = arith.cmpi sge, %16, %25 : vector<1x32xi32>
    %27 = arith.extui %26 : vector<1x32xi1> to vector<1x32xi32>
    %28 = arith.sitofp %27 : vector<1x32xi32> to vector<1x32xf32>
    %c0 = arith.constant 0 : index
    %c0_4 = arith.constant 0 : index
    %29 = vector.load %arg1[%c0, %c0_4] : memref<296x128xf32, #tpu.memory_space<vmem>>, vector<8x4xf32>
    %c0_5 = arith.constant 0 : index
    %c0_6 = arith.constant 0 : index
    %30 = vector.load %arg0[%c0_5, %c0_6] : memref<4x32xf32, #tpu.memory_space<vmem>>, vector<4x32xf32>
    %cst = arith.constant dense<0.000000e+00> : vector<8x32xf32>
    %31 = tpu.matmul %29, %30, %cst {dimension_numbers = #tpu.dot_dimension_numbers<[1], [0], [0], [1], [0, 0, 1, 1], [], []>} : vector<8x4xf32>, vector<4x32xf32>, vector<8x32xf32> -> vector<8x32xf32>
    %c8 = arith.constant 8 : index
    %c0_7 = arith.constant 0 : index
    %32 = vector.load %arg1[%c8, %c0_7] : memref<296x128xf32, #tpu.memory_space<vmem>>, vector<8x1xf32>
    %33 = vector.broadcast %32 : vector<8x1xf32> to vector<8x32xf32>
    %34 = arith.addf %31, %33 : vector<8x32xf32>
    %c16 = arith.constant 16 : index
    %c0_8 = arith.constant 0 : index
    %35 = vector.load %arg1[%c16, %c0_8] : memref<296x128xf32, #tpu.memory_space<vmem>>, vector<8x8xf32>
    %c2_i32_9 = arith.constant 2 : i32
    %36 = tpu.dynamic_rotate %34 by %c2_i32_9 dim 1 : vector<8x32xf32>, i32 -> vector<8x32xf32>
    %37 = vector.broadcast %24 : vector<1x32xf32> to vector<8x32xf32>
    %38 = arith.mulf %36, %37 : vector<8x32xf32>
    %cst_10 = arith.constant dense<0.000000e+00> : vector<8x32xf32>
    %39 = tpu.matmul %35, %38, %cst_10 {dimension_numbers = #tpu.dot_dimension_numbers<[1], [0], [0], [1], [0, 0, 1, 1], [], []>} : vector<8x8xf32>, vector<8x32xf32>, vector<8x32xf32> -> vector<8x32xf32>
    %c24 = arith.constant 24 : index
    %c0_11 = arith.constant 0 : index
    %40 = vector.load %arg1[%c24, %c0_11] : memref<296x128xf32, #tpu.memory_space<vmem>>, vector<8x8xf32>
    %c1_i32_12 = arith.constant 1 : i32
    %41 = tpu.dynamic_rotate %34 by %c1_i32_12 dim 1 : vector<8x32xf32>, i32 -> vector<8x32xf32>
    %42 = vector.broadcast %20 : vector<1x32xf32> to vector<8x32xf32>
    %43 = arith.mulf %41, %42 : vector<8x32xf32>
    %cst_13 = arith.constant dense<0.000000e+00> : vector<8x32xf32>
    %44 = tpu.matmul %40, %43, %cst_13 {dimension_numbers = #tpu.dot_dimension_numbers<[1], [0], [0], [1], [0, 0, 1, 1], [], []>} : vector<8x8xf32>, vector<8x32xf32>, vector<8x32xf32> -> vector<8x32xf32>
    %45 = arith.addf %39, %44 : vector<8x32xf32>
    %c32 = arith.constant 32 : index
    %c0_14 = arith.constant 0 : index
    %46 = vector.load %arg1[%c32, %c0_14] : memref<296x128xf32, #tpu.memory_space<vmem>>, vector<8x8xf32>
    %cst_15 = arith.constant dense<0.000000e+00> : vector<8x32xf32>
    %47 = tpu.matmul %46, %34, %cst_15 {dimension_numbers = #tpu.dot_dimension_numbers<[1], [0], [0], [1], [0, 0, 1, 1], [], []>} : vector<8x8xf32>, vector<8x32xf32>, vector<8x32xf32> -> vector<8x32xf32>
    %48 = arith.addf %45, %47 : vector<8x32xf32>
    %c40 = arith.constant 40 : index
    %c0_16 = arith.constant 0 : index
    %49 = vector.load %arg1[%c40, %c0_16] : memref<296x128xf32, #tpu.memory_space<vmem>>, vector<8x1xf32>
    %50 = vector.broadcast %49 : vector<8x1xf32> to vector<8x32xf32>
    %51 = arith.addf %48, %50 : vector<8x32xf32>
    %cst_17 = arith.constant 0.000000e+00 : f32
    %52 = vector.broadcast %cst_17 : f32 to vector<8x32xf32>
    %53 = arith.maximumf %51, %52 : vector<8x32xf32>
    %c48 = arith.constant 48 : index
    %c0_18 = arith.constant 0 : index
    %54 = vector.load %arg1[%c48, %c0_18] : memref<296x128xf32, #tpu.memory_space<vmem>>, vector<8x8xf32>
    %c2_i32_19 = arith.constant 2 : i32
    %55 = tpu.dynamic_rotate %53 by %c2_i32_19 dim 1 : vector<8x32xf32>, i32 -> vector<8x32xf32>
    %56 = vector.broadcast %24 : vector<1x32xf32> to vector<8x32xf32>
    %57 = arith.mulf %55, %56 : vector<8x32xf32>
    %cst_20 = arith.constant dense<0.000000e+00> : vector<8x32xf32>
    %58 = tpu.matmul %54, %57, %cst_20 {dimension_numbers = #tpu.dot_dimension_numbers<[1], [0], [0], [1], [0, 0, 1, 1], [], []>} : vector<8x8xf32>, vector<8x32xf32>, vector<8x32xf32> -> vector<8x32xf32>
    %c56 = arith.constant 56 : index
    %c0_21 = arith.constant 0 : index
    %59 = vector.load %arg1[%c56, %c0_21] : memref<296x128xf32, #tpu.memory_space<vmem>>, vector<8x8xf32>
    %c1_i32_22 = arith.constant 1 : i32
    %60 = tpu.dynamic_rotate %53 by %c1_i32_22 dim 1 : vector<8x32xf32>, i32 -> vector<8x32xf32>
    %61 = vector.broadcast %20 : vector<1x32xf32> to vector<8x32xf32>
    %62 = arith.mulf %60, %61 : vector<8x32xf32>
    %cst_23 = arith.constant dense<0.000000e+00> : vector<8x32xf32>
    %63 = tpu.matmul %59, %62, %cst_23 {dimension_numbers = #tpu.dot_dimension_numbers<[1], [0], [0], [1], [0, 0, 1, 1], [], []>} : vector<8x8xf32>, vector<8x32xf32>, vector<8x32xf32> -> vector<8x32xf32>
    %64 = arith.addf %58, %63 : vector<8x32xf32>
    %c64 = arith.constant 64 : index
    %c0_24 = arith.constant 0 : index
    %65 = vector.load %arg1[%c64, %c0_24] : memref<296x128xf32, #tpu.memory_space<vmem>>, vector<8x8xf32>
    %cst_25 = arith.constant dense<0.000000e+00> : vector<8x32xf32>
    %66 = tpu.matmul %65, %53, %cst_25 {dimension_numbers = #tpu.dot_dimension_numbers<[1], [0], [0], [1], [0, 0, 1, 1], [], []>} : vector<8x8xf32>, vector<8x32xf32>, vector<8x32xf32> -> vector<8x32xf32>
    %67 = arith.addf %64, %66 : vector<8x32xf32>
    %c72 = arith.constant 72 : index
    %c0_26 = arith.constant 0 : index
    %68 = vector.load %arg1[%c72, %c0_26] : memref<296x128xf32, #tpu.memory_space<vmem>>, vector<8x1xf32>
    %69 = vector.broadcast %68 : vector<8x1xf32> to vector<8x32xf32>
    %70 = arith.addf %67, %69 : vector<8x32xf32>
    %cst_27 = arith.constant 0.000000e+00 : f32
    %71 = vector.broadcast %cst_27 : f32 to vector<8x32xf32>
    %72 = arith.maximumf %70, %71 : vector<8x32xf32>
    %73 = arith.addf %72, %34 : vector<8x32xf32>
    %cst_28 = arith.constant 0.000000e+00 : f32
    %74 = vector.broadcast %cst_28 : f32 to vector<8x32xf32>
    %75 = arith.maximumf %73, %74 : vector<8x32xf32>
    %c80 = arith.constant 80 : index
    %c0_29 = arith.constant 0 : index
    %76 = vector.load %arg1[%c80, %c0_29] : memref<296x128xf32, #tpu.memory_space<vmem>>, vector<12x8xf32>
    %c4_i32_30 = arith.constant 4 : i32
    %77 = tpu.dynamic_rotate %75 by %c4_i32_30 dim 1 : vector<8x32xf32>, i32 -> vector<8x32xf32>
    %78 = vector.broadcast %28 : vector<1x32xf32> to vector<8x32xf32>
    %79 = arith.mulf %77, %78 : vector<8x32xf32>
    %cst_31 = arith.constant dense<0.000000e+00> : vector<12x32xf32>
    %80 = tpu.matmul %76, %79, %cst_31 {dimension_numbers = #tpu.dot_dimension_numbers<[1], [0], [0], [1], [0, 0, 1, 1], [], []>} : vector<12x8xf32>, vector<8x32xf32>, vector<12x32xf32> -> vector<12x32xf32>
    %c96 = arith.constant 96 : index
    %c0_32 = arith.constant 0 : index
    %81 = vector.load %arg1[%c96, %c0_32] : memref<296x128xf32, #tpu.memory_space<vmem>>, vector<12x8xf32>
    %c2_i32_33 = arith.constant 2 : i32
    %82 = tpu.dynamic_rotate %75 by %c2_i32_33 dim 1 : vector<8x32xf32>, i32 -> vector<8x32xf32>
    %83 = vector.broadcast %24 : vector<1x32xf32> to vector<8x32xf32>
    %84 = arith.mulf %82, %83 : vector<8x32xf32>
    %cst_34 = arith.constant dense<0.000000e+00> : vector<12x32xf32>
    %85 = tpu.matmul %81, %84, %cst_34 {dimension_numbers = #tpu.dot_dimension_numbers<[1], [0], [0], [1], [0, 0, 1, 1], [], []>} : vector<12x8xf32>, vector<8x32xf32>, vector<12x32xf32> -> vector<12x32xf32>
    %86 = arith.addf %80, %85 : vector<12x32xf32>
    %c112 = arith.constant 112 : index
    %c0_35 = arith.constant 0 : index
    %87 = vector.load %arg1[%c112, %c0_35] : memref<296x128xf32, #tpu.memory_space<vmem>>, vector<12x8xf32>
    %cst_36 = arith.constant dense<0.000000e+00> : vector<12x32xf32>
    %88 = tpu.matmul %87, %75, %cst_36 {dimension_numbers = #tpu.dot_dimension_numbers<[1], [0], [0], [1], [0, 0, 1, 1], [], []>} : vector<12x8xf32>, vector<8x32xf32>, vector<12x32xf32> -> vector<12x32xf32>
    %89 = arith.addf %86, %88 : vector<12x32xf32>
    %c128 = arith.constant 128 : index
    %c0_37 = arith.constant 0 : index
    %90 = vector.load %arg1[%c128, %c0_37] : memref<296x128xf32, #tpu.memory_space<vmem>>, vector<12x1xf32>
    %91 = vector.broadcast %90 : vector<12x1xf32> to vector<12x32xf32>
    %92 = arith.addf %89, %91 : vector<12x32xf32>
    %cst_38 = arith.constant 0.000000e+00 : f32
    %93 = vector.broadcast %cst_38 : f32 to vector<12x32xf32>
    %94 = arith.maximumf %92, %93 : vector<12x32xf32>
    %c144 = arith.constant 144 : index
    %c0_39 = arith.constant 0 : index
    %95 = vector.load %arg1[%c144, %c0_39] : memref<296x128xf32, #tpu.memory_space<vmem>>, vector<12x12xf32>
    %c4_i32_40 = arith.constant 4 : i32
    %96 = tpu.dynamic_rotate %94 by %c4_i32_40 dim 1 : vector<12x32xf32>, i32 -> vector<12x32xf32>
    %97 = vector.broadcast %28 : vector<1x32xf32> to vector<12x32xf32>
    %98 = arith.mulf %96, %97 : vector<12x32xf32>
    %cst_41 = arith.constant dense<0.000000e+00> : vector<12x32xf32>
    %99 = tpu.matmul %95, %98, %cst_41 {dimension_numbers = #tpu.dot_dimension_numbers<[1], [0], [0], [1], [0, 0, 1, 1], [], []>} : vector<12x12xf32>, vector<12x32xf32>, vector<12x32xf32> -> vector<12x32xf32>
    %c160 = arith.constant 160 : index
    %c0_42 = arith.constant 0 : index
    %100 = vector.load %arg1[%c160, %c0_42] : memref<296x128xf32, #tpu.memory_space<vmem>>, vector<12x12xf32>
    %c2_i32_43 = arith.constant 2 : i32
    %101 = tpu.dynamic_rotate %94 by %c2_i32_43 dim 1 : vector<12x32xf32>, i32 -> vector<12x32xf32>
    %102 = vector.broadcast %24 : vector<1x32xf32> to vector<12x32xf32>
    %103 = arith.mulf %101, %102 : vector<12x32xf32>
    %cst_44 = arith.constant dense<0.000000e+00> : vector<12x32xf32>
    %104 = tpu.matmul %100, %103, %cst_44 {dimension_numbers = #tpu.dot_dimension_numbers<[1], [0], [0], [1], [0, 0, 1, 1], [], []>} : vector<12x12xf32>, vector<12x32xf32>, vector<12x32xf32> -> vector<12x32xf32>
    %105 = arith.addf %99, %104 : vector<12x32xf32>
    %c176 = arith.constant 176 : index
    %c0_45 = arith.constant 0 : index
    %106 = vector.load %arg1[%c176, %c0_45] : memref<296x128xf32, #tpu.memory_space<vmem>>, vector<12x12xf32>
    %cst_46 = arith.constant dense<0.000000e+00> : vector<12x32xf32>
    %107 = tpu.matmul %106, %94, %cst_46 {dimension_numbers = #tpu.dot_dimension_numbers<[1], [0], [0], [1], [0, 0, 1, 1], [], []>} : vector<12x12xf32>, vector<12x32xf32>, vector<12x32xf32> -> vector<12x32xf32>
    %108 = arith.addf %105, %107 : vector<12x32xf32>
    %c192 = arith.constant 192 : index
    %c0_47 = arith.constant 0 : index
    %109 = vector.load %arg1[%c192, %c0_47] : memref<296x128xf32, #tpu.memory_space<vmem>>, vector<12x1xf32>
    %110 = vector.broadcast %109 : vector<12x1xf32> to vector<12x32xf32>
    %111 = arith.addf %108, %110 : vector<12x32xf32>
    %cst_48 = arith.constant 0.000000e+00 : f32
    %112 = vector.broadcast %cst_48 : f32 to vector<12x32xf32>
    %113 = arith.maximumf %111, %112 : vector<12x32xf32>
    %c208 = arith.constant 208 : index
    %c0_49 = arith.constant 0 : index
    %114 = vector.load %arg1[%c208, %c0_49] : memref<296x128xf32, #tpu.memory_space<vmem>>, vector<12x8xf32>
    %cst_50 = arith.constant dense<0.000000e+00> : vector<12x32xf32>
    %115 = tpu.matmul %114, %75, %cst_50 {dimension_numbers = #tpu.dot_dimension_numbers<[1], [0], [0], [1], [0, 0, 1, 1], [], []>} : vector<12x8xf32>, vector<8x32xf32>, vector<12x32xf32> -> vector<12x32xf32>
    %c224 = arith.constant 224 : index
    %c0_51 = arith.constant 0 : index
    %116 = vector.load %arg1[%c224, %c0_51] : memref<296x128xf32, #tpu.memory_space<vmem>>, vector<12x1xf32>
    %117 = vector.broadcast %116 : vector<12x1xf32> to vector<12x32xf32>
    %118 = arith.addf %115, %117 : vector<12x32xf32>
    %119 = arith.addf %113, %118 : vector<12x32xf32>
    %cst_52 = arith.constant 0.000000e+00 : f32
    %120 = vector.broadcast %cst_52 : f32 to vector<12x32xf32>
    %121 = arith.maximumf %119, %120 : vector<12x32xf32>
    %c240 = arith.constant 240 : index
    %c0_53 = arith.constant 0 : index
    %122 = vector.load %arg1[%c240, %c0_53] : memref<296x128xf32, #tpu.memory_space<vmem>>, vector<4x12xf32>
    %cst_54 = arith.constant dense<0.000000e+00> : vector<4x32xf32>
    %123 = tpu.matmul %122, %121, %cst_54 {dimension_numbers = #tpu.dot_dimension_numbers<[1], [0], [0], [1], [0, 0, 1, 1], [], []>} : vector<4x12xf32>, vector<12x32xf32>, vector<4x32xf32> -> vector<4x32xf32>
    %c248 = arith.constant 248 : index
    %c0_55 = arith.constant 0 : index
    %124 = vector.load %arg1[%c248, %c0_55] : memref<296x128xf32, #tpu.memory_space<vmem>>, vector<4x1xf32>
    %125 = vector.broadcast %124 : vector<4x1xf32> to vector<4x32xf32>
    %126 = arith.addf %123, %125 : vector<4x32xf32>
    %c256 = arith.constant 256 : index
    %c0_56 = arith.constant 0 : index
    %127 = vector.load %arg1[%c256, %c0_56] : memref<296x128xf32, #tpu.memory_space<vmem>>, vector<32x16xf32>
    %cst_57 = arith.constant dense<0.000000e+00> : vector<4x16xf32>
    %128 = tpu.matmul %126, %127, %cst_57 {dimension_numbers = #tpu.dot_dimension_numbers<[1], [0], [0], [1], [0, 0, 1, 1], [], []>} : vector<4x32xf32>, vector<32x16xf32>, vector<4x16xf32> -> vector<4x16xf32>
    %c288 = arith.constant 288 : index
    %c0_58 = arith.constant 0 : index
    %129 = vector.load %arg1[%c288, %c0_58] : memref<296x128xf32, #tpu.memory_space<vmem>>, vector<1x16xf32>
    %130 = vector.broadcast %129 : vector<1x16xf32> to vector<4x16xf32>
    %131 = arith.addf %128, %130 : vector<4x16xf32>
    %c0_59 = arith.constant 0 : index
    %c0_60 = arith.constant 0 : index
    %132 = vector.load %arg2[%c0_59, %c0_60] : memref<4x16xf32, #tpu.memory_space<vmem>>, vector<4x16xf32>
    tpu.vector_store %arg2[%c0_59, %c0_60], %131 {strides = array<i32>} : memref<4x16xf32, #tpu.memory_space<vmem>>, vector<4x16xf32>,
    return
  }
}

</mosaic_0001>

<bundles_post_ra>
// kernel: tpu_custom_call.1
= control target key start
LH: loop header
LB: loop body
LE: loop exit
PB: predicated region body
PF: predicated region fallthrough
CT: control target
= control target key end

     0   :  { %7 = vsyncpa [#allocation3], 0  ;;  %s2033_s0 = inlined_call_operand.hbm [shape: f32[4,32], index: 0, kind: input, shape index: {}]   ;;  %s2034_s1 = inlined_call_operand.hbm [shape: f32[296,128], index: 1, kind: input, shape index: {}]   ;;  %s2035_s2 = inlined_call_operand.hbm [shape: f32[4,16], index: 2, kind: output, shape index: {}]  }
   0x1   :  { %8 = vsyncpa [#allocation6], 0 }
   0x2   :  { %9 = vsyncpa [#allocation4], 0  ;;  %s1837_s9 = smov [#allocation2]   ;;  %s1838_s11 = smov [#allocation5]  }
   0x3   :  { %s16_s10 = sshll.u32 %s1837_s9, 4  ;;  %s25_s12 = sshll.u32 %s1838_s11, 4  ;;  %s17_s10 = int_to_ptr.vmem [resolvable:$true] %s16_s10  ;;  %s1869_s12 = int_to_ptr.vmem [resolvable:$true] %s25_s12 }
   0x4   :  { %s1765_s15 = scalar_lea.hbm %s2033_s0, 64 }
   0x5   :  { %p1766_p0 = scmp.ne.s32.totalorder %s2033_s0, %s1765_s15  ;;  %p1769_p1 = scmp.lt.u32.totalorder %s1765_s15, %s2033_s0 }
   0x7   :  { %p1771_p2 = pnand %p1769_p1, %p1766_p0 }
   0x9   :  { %1774 = shalt.err (!%p1771_p2)
}
   0xa   :  { %s1775_s20 = scalar_lea.vmem %s17_s10, 64  ;;  %p1780_p4 = scmp.lt.s32.totalorder %s17_s10, %s17_s10 }
   0xb   :  { %p1776_p3 = scmp.ne.s32.totalorder %s17_s10, %s1775_s20  ;;  %p1781_p5 = scmp.lt.s32.totalorder %s1775_s20, %s1775_s20 }
   0xd   :  { %p1782_p6 = por %p1781_p5, %p1780_p4 }
   0xf   :  { %p1783_p7 = pnand %p1782_p6, %p1776_p3 }
  0x11   :  { %1786 = shalt.err (!%p1783_p7)
}
  0x12   :  { %19 = dma.hbm_to_vmem [thread:$0]  %s2033_s0, 64, %s17_s10, [#allocation3]  }
  0x13   :  { %s1787_s25 = scalar_lea.hbm %s2034_s1, 4736 }
  0x14   :  { %p1788_p8 = scmp.ne.s32.totalorder %s2034_s1, %s1787_s25  ;;  %p1791_p9 = scmp.lt.u32.totalorder %s1787_s25, %s2034_s1 }
  0x16   :  { %p1793_p10 = pnand %p1791_p9, %p1788_p8 }
  0x18   :  { %1796 = shalt.err (!%p1793_p10)
}
  0x19   :  { %s1797_s30 = scalar_lea.vmem %s1869_s12, 4736  ;;  %p1802_p12 = scmp.lt.s32.totalorder %s1869_s12, %s1869_s12 }
  0x1a   :  { %p1798_p11 = scmp.ne.s32.totalorder %s1869_s12, %s1797_s30  ;;  %p1803_p13 = scmp.lt.s32.totalorder %s1797_s30, %s1797_s30 }
  0x1c   :  { %p1804_p0 = por %p1803_p13, %p1802_p12 }
  0x1e   :  { %p1805_p1 = pnand %p1804_p0, %p1798_p11 }
  0x20   :  { %1808 = shalt.err (!%p1805_p1)
}
  0x21   :  { %s1839_s0 = smov 128   ;;  %s1840_s3 = smov 8  }
  0x22   :  { %31 = dma.hbm_to_vmem [thread:$0]  %s2034_s1, 4736, %s1869_s12, [#allocation6], %s1839_s0, %s1839_s0, %s1840_s3  }
  0x23   :  { %1831 = dma.done.wait [#allocation3], 64  }
  0x24   :  { %1832 = vsyncadd [#allocation3], 4294967232 }
  0x25   :  { %1833 = dma.done.wait [#allocation6], 4736  }
  0x26   :  { %1834 = vsyncadd [#allocation6], 4294962560  ;;  %v1841_v0 = vmov 0.0   ;;  %vm1842_vm0 = vmmov 0   ;;  %v1843_v1 = vmov 0   ;;  %vm73_vm1 = vcmask 1043456  }
  0x27   :  { %1606 = vmatprep.subr.mxu0 %v1841_v0  ;;  %1608 = vmatprep.mubr.msk.f32.mxu0 %vm1842_vm0, %v1841_v0  ;;  %vm69_vm2 = vcmask 31744   ;;  %v62_v2 = vld [vmem:[#allocation2] sm:$0xf]  ;;  %v61_v3 = vld [vmem:[#allocation5] sm:$0xff]  ;;  %v63_v4 = vld [vmem:[#allocation5 + $0x8] sm:$0xff]  ;;  %v38_v5 = vlaneseq  ;;  %s1844_s1 = smov 32  }
  0x28   :  { %1753 = vset.pattern.permute.xlu0 %v1843_v1  ;;  %1611 = vmatprep.subr.mxu1 %v1841_v0  ;;  %s1845_s6 = smov 30   ;;  %vm148_vm4 = vcmask 1047808   ;;  %s1846_s7 = smov 31   ;;  %v396_v22 = vld [vmem:[#allocation5 + $0x28] sm:$0xff]  ;;  %vm170_vm6 = vcmask 64512   ;;  %v147_v23 = vld [vmem:[#allocation5 + $0x10] sm:$0xff] }
  0x29   :  { %1613 = vmatprep.mubr.msk.f32.mxu1 %vm1842_vm0, %v1841_v0  ;;  %1754 = vset.pattern.permute.xlu1 %v1843_v1  ;;  %v39_v6 = vand.u32 127, %v38_v5  ;;  %s1847_s8 = smov 98   ;;  %s1848_s9 = smov 97   ;;  %v160_v25 = vld [vmem:[#allocation5 + $0x18] sm:$0xff]  ;;  %v321_v27 = vld [vmem:[#allocation5 + $0x20] sm:$0xff]  ;;  %v643_v45 = vld [vmem:[#allocation5 + $0x48] sm:$0xff] }
  0x2a   :  { %1607 = vmatpush3.msk.msra.mxu0 %vm73_vm1, %v62_v2  ;;  %66 = vperm.xlu0 %1753, %v63_v4   ;;  %v412_v46 = vld [vmem:[#allocation5 + $0x38] sm:$0xff]  ;;  %v404_v47 = vld [vmem:[#allocation5 + $0x30] sm:$0xff]  ;;  %v568_v50 = vld [vmem:[#allocation5 + $0x40] sm:$0xff]  ;;  %s1849_s10 = smov 28   ;;  %s1850_s11 = smov 100   ;;  %vm967_vm8 = vcmask 97280  }
  0x2b   :  { %1609 = vmatmul.mubr.msk.f32.vlgmr.msra.gmra.mrb[0].mxu0 %vm69_vm2, %v61_v3  ;;  %1616 = vmatprep.subr.mxu0 %v1841_v0  ;;  %v1910_v7 = vand.u32 15, %v39_v6  ;;  %v666_v4 = vld [vmem:[#allocation5 + $0x60] sm:$0xff]  ;;  %vm1851_vm9 = vmmov 1   ;;  %vm1436_vm11 = vcmask 261120   ;;  %s1853_s12 = smov [#allocation7]   ;;  %vm1510_vm12 = vcmask 125952  }
  0x2c   :  { %1618 = vmatprep.mubr.msk.f32.mxu0 %vm1842_vm0, %v1841_v0  ;;  %vm1995_vm10 = vmpackc.low %vm73_vm1, %vm1851_vm9  ;;  %s1518_s13 = sshll.u32 %s1853_s12, 4  ;;  %s1519_s13 = int_to_ptr.vmem [resolvable:$true] %s1518_s13 }
  0x2d   :  { %vm55_vm3 = vcmp.ge.s32.totalorder %v1910_v7, 2  ;;  %vm52_vm5 = vcmp.ge.s32.totalorder %v1910_v7, 1  ;;  %vm58_vm7 = vcmp.ge.s32.totalorder %v1910_v7, 4  ;;  %s1809_s14 = scalar_lea.vmem %s1519_s13, 64  ;;  %p1814_p3 = scmp.lt.s32.totalorder %s1519_s13, %s1519_s13 }
  0x2e   :  { %v1529_v12 = vsel %vm55_vm3, 1.0, %v1841_v0  ;;  %v1528_v15 = vsel %vm52_vm5, 1.0, %v1841_v0  ;;  %v1530_v1 = vsel %vm58_vm7, 1.0, %v1841_v0  ;;  %p1810_p2 = scmp.ne.s32.totalorder %s1519_s13, %s1809_s14  ;;  %p1815_p4 = scmp.lt.s32.totalorder %s1809_s14, %s1809_s14 }
  0x30   :  { %p1816_p5 = por %p1815_p4, %p1814_p3 }
  0x32   :  { %p1817_p6 = pnand %p1816_p5, %p1810_p2 }
  0xa9   :  { %v67_v8 = vpop.permute.xlu0 %66 }
  0xfe   :  { %v143_v9 = vpop.f32.mrb[0].mxu0 }
  0xff   :  { %v1912_v10 = vadd.f32 %v143_v9, %v67_v8  ;;  %v1610_v11 = vpop.f32.mrb[1].mxu0 }
 0x100   :  { %v925_v11 = vld [vmem:[#allocation5 + $0x88] sm:$0xf] }
 0x101   :  { %149 = vrot.lane.b32.xlu0 %v1912_v10, %s1844_s1 }
 0x105   :  { %156 = vrot.lane.b32.xlu0 %v1529_v12, %s1845_s6 }
 0x173   :  { %v150_v13 = vpop.permute.xlu0 %149 }
 0x174   :  { %v151_v14 = vsel %vm148_vm4, %v150_v13, %v1912_v10  ;;  %v667_v13 = vld [vmem:[#allocation5 + $0x68] sm:$0xf] }
 0x175   :  { %152 = vrot.lane.b32.xlu1 %v151_v14, %s1844_s1  ;;  %v653_v14 = vld [vmem:[#allocation5 + $0x50] sm:$0xff] }
 0x177   :  { %v1923_v16 = vpop.permute.xlu0 %156 }
 0x179   :  { %162 = vrot.lane.b32.xlu1 %v1528_v15, %s1846_s7 }
 0x1e7   :  { %v153_v17 = vpop.permute.xlu1 %152 }
 0x1e8   :  { %v154_v18 = vsel %vm148_vm4, %v153_v17, %v1912_v10  ;;  %v654_v17 = vld [vmem:[#allocation5 + $0x58] sm:$0xf] }
 0x1e9   :  { %v159_v19 = vmul.f32 %v1923_v16, %v154_v18 }
 0x1eb   :  { %v163_v20 = vpop.permute.xlu1 %162  ;;  %245 = vrot.lane.b32.xlu0 %v159_v19, %s1847_s8  ;;  %v840_v19 = vld [vmem:[#allocation5 + $0x78] sm:$0xf] }
 0x1ec   :  { %v165_v21 = vmul.f32 %v163_v20, %v154_v18  ;;  %v839_v18 = vld [vmem:[#allocation5 + $0x70] sm:$0xff] }
 0x1ee   :  { %167 = vrot.lane.b32.xlu1 %v165_v21, %s1848_s9  ;;  %v1246_v21 = vld [vmem:[#allocation5 + $0xd8] sm:$0xf] }
 0x1f2   :  { %399 = vperm.xlu1 %1754, %v396_v22  }
 0x25d   :  { %v246_v24 = vpop.permute.xlu0 %245 }
 0x25e   :  { %1617 = vmatpush3.msra.mxu0 %v246_v24 }
 0x25f   :  { %1619 = vmatmul.mubr.msk.f32.vlgmr.msra.gmra.mrb[2].mxu0 %vm170_vm6, %v147_v23  ;;  %1626 = vmatprep.subr.mxu0 %v1841_v0 }
 0x260   :  { %v168_v26 = vpop.permute.xlu1 %167  ;;  %1628 = vmatprep.mubr.msk.f32.mxu0 %vm1842_vm0, %v1841_v0 }
 0x261   :  { %1612 = vmatpush3.msra.mxu1 %v168_v26 }
 0x262   :  { %1614 = vmatmul.mubr.msk.f32.vlgmr.msra.gmra.mrb[0].mxu1 %vm170_vm6, %v160_v25  ;;  %1621 = vmatprep.subr.mxu1 %v1841_v0 }
 0x263   :  { %1622 = vmatpush3.msra.mxu1 %v1912_v10  ;;  %1623 = vmatprep.mubr.msk.f32.mxu1 %vm1842_vm0, %v1841_v0 }
 0x264   :  { %1631 = vmatprep.subr.mxu1 %v1841_v0 }
 0x266   :  { %1624 = vmatmul.mubr.msk.f32.vlgmr.msra.gmra.mrb[2].mxu1 %vm170_vm6, %v321_v27 }
 0x267   :  { %1633 = vmatprep.mubr.msk.f32.mxu1 %vm1842_vm0, %v1841_v0 }
 0x271   :  { %v400_v34 = vpop.permute.xlu1 %399 }
 0x332   :  { %v317_v28 = vpop.f32.mrb[2].mxu0 }
 0x333   :  { %v1620_v29 = vpop.f32.mrb[3].mxu0 }
 0x335   :  { %v240_v30 = vpop.f32.mrb[0].mxu1 }
 0x336   :  { %v318_v31 = vadd.f32 %v317_v28, %v240_v30  ;;  %v1615_v32 = vpop.f32.mrb[1].mxu1 }
 0x339   :  { %v391_v33 = vpop.f32.mrb[2].mxu1 }
 0x33a   :  { %v395_v35 = vadd.f32 %v391_v33, %v318_v31  ;;  %v1625_v36 = vpop.f32.mrb[3].mxu1 }
 0x33c   :  { %v402_v37 = vadd.f32 %v400_v34, %v395_v35  ;;  %v956_v35 = vld [vmem:[#allocation5 + $0xa0] sm:$0xff] }
 0x33e   :  { %v403_v38 = vmax.f32 %v402_v37, 0.0 }
 0x340   :  { %405 = vrot.lane.b32.xlu0 %v403_v38, %s1844_s1 }
 0x3b2   :  { %v406_v39 = vpop.permute.xlu0 %405 }
 0x3b3   :  { %v407_v40 = vsel %vm148_vm4, %v406_v39, %v403_v38 }
 0x3b4   :  { %408 = vrot.lane.b32.xlu1 %v407_v40, %s1844_s1 }
 0x426   :  { %v409_v41 = vpop.permute.xlu1 %408 }
 0x427   :  { %v410_v42 = vsel %vm148_vm4, %v409_v41, %v403_v38 }
 0x428   :  { %v411_v43 = vmul.f32 %v410_v42, %v1923_v16  ;;  %v413_v44 = vmul.f32 %v410_v42, %v163_v20  ;;  %v1245_v20 = vld [vmem:[#allocation5 + $0xd0] sm:$0xff] }
 0x42a   :  { %415 = vrot.lane.b32.xlu0 %v413_v44, %s1848_s9  ;;  %492 = vrot.lane.b32.xlu1 %v411_v43, %s1847_s8 }
 0x42e   :  { %646 = vperm.xlu0 %1753, %v643_v45   ;;  %v1229_v45 = vld [vmem:[#allocation5 + $0xc0] sm:$0xff] }
 0x49c   :  { %v416_v48 = vpop.permute.xlu0 %415  ;;  %v493_v49 = vpop.permute.xlu1 %492 }
 0x49d   :  { %1627 = vmatpush3.msra.mxu0 %v416_v48  ;;  %1632 = vmatpush3.msra.mxu1 %v493_v49  ;;  %v1247_v48 = vld [vmem:[#allocation5 + $0xe0] sm:$0xff]  ;;  %v1248_v49 = vld [vmem:[#allocation5 + $0xe8] sm:$0xf] }
 0x49e   :  { %1629 = vmatmul.mubr.msk.f32.vlgmr.msra.gmra.mrb[4].mxu0 %vm170_vm6, %v412_v46  ;;  %1634 = vmatmul.mubr.msk.f32.vlgmr.msra.gmra.mrb[4].mxu1 %vm170_vm6, %v404_v47  ;;  %v1230_v46 = vld [vmem:[#allocation5 + $0xc8] sm:$0xf] }
 0x49f   :  { %1636 = vmatprep.subr.mxu0 %v1841_v0  ;;  %1638 = vmatprep.mubr.msk.f32.mxu0 %vm1842_vm0, %v1841_v0 }
 0x4a0   :  { %1637 = vmatpush3.msra.mxu0 %v403_v38  ;;  %1643 = vmatprep.mubr.msk.f32.mxu1 %vm170_vm6, %v666_v4  ;;  %v1427_v4 = vld [vmem:[#allocation5 + $0x100] sm:$0xff] }
 0x4a2   :  { %1639 = vmatmul.mubr.msk.f32.vlgmr.msra.gmra.mrb[6].mxu0 %vm170_vm6, %v568_v50 }
 0x4a3   :  { %1660 = vmatprep.mubr.msk.f32.mxu0 %vm967_vm8, %v956_v35 }
 0x4ad   :  { %v647_v59 = vpop.permute.xlu0 %646 }
 0x571   :  { %v487_v51 = vpop.f32.mrb[4].mxu0  ;;  %v564_v52 = vpop.f32.mrb[4].mxu1 }
 0x572   :  { %v565_v53 = vadd.f32 %v564_v52, %v487_v51  ;;  %v1630_v54 = vpop.f32.mrb[5].mxu0  ;;  %v1635_v55 = vpop.f32.mrb[5].mxu1  ;;  %v1345_v51 = vld [vmem:[#allocation5 + $0xf8] sm:$0xf] }
 0x575   :  { %v638_v56 = vpop.f32.mrb[6].mxu0 }
 0x576   :  { %v642_v57 = vadd.f32 %v638_v56, %v565_v53  ;;  %v1640_v58 = vpop.f32.mrb[7].mxu0 }
 0x578   :  { %v649_v60 = vadd.f32 %v647_v59, %v642_v57 }
 0x57a   :  { %v650_v61 = vmax.f32 %v649_v60, 0.0  ;;  %v957_v60 = vld [vmem:[#allocation5 + $0xa8] sm:$0xf] }
 0x57c   :  { %v651_v62 = vadd.f32 %v650_v61, %v1912_v10  ;;  %v924_v10 = vld [vmem:[#allocation5 + $0x80] sm:$0xff]  ;;  %v940_v61 = vld [vmem:[#allocation5 + $0x90] sm:$0xff] }
 0x57e   :  { %v652_v63 = vmax.f32 %v651_v62, 0.0 }
 0x580   :  { %655 = vrot.lane.b32.xlu1 %v652_v63, %s1844_s1 }
 0x584   :  { %662 = vrot.lane.b32.xlu1 %v1530_v1, %s1849_s10  ;;  %v1141_v1 = vld [vmem:[#allocation5 + $0xb0] sm:$0xff] }
 0x5f2   :  { %v656_v2 = vpop.permute.xlu1 %655 }
 0x5f3   :  { %v657_v3 = vsel %vm148_vm4, %v656_v2, %v652_v63  ;;  %v1142_v2 = vld [vmem:[#allocation5 + $0xb8] sm:$0xf] }
 0x5f4   :  { %658 = vrot.lane.b32.xlu0 %v657_v3, %s1844_s1  ;;  %v1852_v3 = vmov 0.0|0.0  }
 0x5f6   :  { %v1963_v5 = vpop.permute.xlu1 %662 }
 0x666   :  { %v659_v6 = vpop.permute.xlu0 %658 }
 0x667   :  { %v660_v8 = vsel %vm148_vm4, %v659_v6, %v652_v63 }
 0x668   :  { %v668_v7 = vmul.f32 %v660_v8, %v1923_v16  ;;  %v665_v9 = vmul.f32 %v1963_v5, %v660_v8 }
 0x66a   :  { %670 = vrot.lane.b32.xlu0 %v668_v7, %s1847_s8  ;;  %755 = vrot.lane.b32.xlu1 %v665_v9, %s1850_s11 }
 0x66e   :  { %928 = vperm.xlu0 %1753, %v924_v10   ;;  %933 = vperm.xlu1 %1754, %v925_v11  }
 0x6dc   :  { %v671_v12 = vpop.permute.xlu0 %670  ;;  %v756_v15 = vpop.permute.xlu1 %755 }
 0x6dd   :  { %1641 = vmatprep.subr.mxu1 %v671_v12 }
 0x6de   :  { %1642 = vmatpush3.msra.mxu1 %v671_v12 }
 0x6df   :  { %1644 = vmatmul.mubr.msk.f32.vlgmr.msra.gmra.mrb[6].mxu1 %vm170_vm6, %v667_v13  ;;  %1646 = vmatprep.subr.mxu1 %v756_v15 }
 0x6e0   :  { %1647 = vmatpush3.msra.mxu1 %v756_v15  ;;  %1648 = vmatprep.mubr.msk.f32.mxu1 %vm170_vm6, %v653_v14 }
 0x6e1   :  { %1651 = vmatprep.subr.mxu1 %v652_v63 }
 0x6e7   :  { %1649 = vmatmul.mubr.msk.f32.vlgmr.msra.gmra.mrb[6].mxu1 %vm170_vm6, %v654_v17 }
 0x6e8   :  { %1652 = vmatpush3.msra.mxu1 %v652_v63  ;;  %1653 = vmatprep.mubr.msk.f32.mxu1 %vm170_vm6, %v839_v18 }
 0x6e9   :  { %1677 = vmatprep.subr.mxu1 %v652_v63 }
 0x6ed   :  { %v934_v22 = vpop.permute.xlu1 %933  ;;  %v929_v24 = vpop.permute.xlu0 %928 }
 0x6ef   :  { %1654 = vmatmul.mubr.msk.f32.vlgmr.msra.gmra.mrb[6].mxu1 %vm170_vm6, %v840_v19 }
 0x6f0   :  { %1678 = vmatpush3.msra.mxu1 %v652_v63  ;;  %1679 = vmatprep.mubr.msk.f32.mxu1 %vm170_vm6, %v1245_v20  ;;  %v941_v63 = vld [vmem:[#allocation5 + $0x98] sm:$0xf] }
 0x6f1   :  { %1722 = vmatprep.subr.bf16.mxu1 %v1852_v3 }
 0x6f3   :  { %1680 = vmatmul.mubr.msk.f32.vlgmr.msra.gmra.mrb[8].mxu1 %vm170_vm6, %v1246_v21 }
 0x6f4   :  { %1697 = vmatprep.mubr.msk.f32.mxu1 %vm1842_vm0, %v1841_v0 }
 0x7c2   :  { %v1655_v23 = vpop.f32.mrb[6].mxu1 }
 0x7c3   :  { %v937_v25 = vadd.f32 %v1655_v23, %v934_v22  ;;  %v913_v26 = vpop.f32.mrb[7].mxu1 }
 0x7c4   :  { %v936_v27 = vadd.f32 %v929_v24, %v913_v26  ;;  %v1344_v24 = vld [vmem:[#allocation5 + $0xf0] sm:$0xf]  ;;  %v1430_v26 = vld [vmem:[#allocation5 + $0x118] sm:$0xff] }
 0x7c5   :  { %v939_v28 = vmax.f32 %v937_v25, 0.0  ;;  %v1429_v25 = vld [vmem:[#allocation5 + $0x110] sm:$0xff] }
 0x7c6   :  { %v938_v29 = vmax.f32 %v936_v27, 0.0  ;;  %v1681_v47 = vpop.f32.mrb[8].mxu1  ;;  %v1726_v27 = vpack.c.bf16 %v1430_v26, %v1429_v25 }
 0x7c7   :  { %945 = vrot.lane.b32.xlu1 %v939_v28, %s1844_s1  ;;  %v1331_v50 = vpop.f32.mrb[9].mxu1 }
 0x7c8   :  { %942 = vrot.lane.b32.xlu0 %v938_v29, %s1844_s1  ;;  %v1712_v62 = vpack.c.bf16 %v939_v28, %v938_v29 }
 0x839   :  { %v946_v30 = vpop.permute.xlu1 %945 }
 0x83a   :  { %v943_v31 = vpop.permute.xlu0 %942  ;;  %v947_v32 = vsel %vm148_vm4, %v946_v30, %v939_v28 }
 0x83b   :  { %950 = vrot.lane.b32.xlu1 %v947_v32, %s1844_s1  ;;  %v944_v33 = vsel %vm148_vm4, %v943_v31, %v938_v29  ;;  %v1558_v32 = vld [vmem:[#allocation5 + $0x120] ss:$0 sm:$0xff] }
 0x83c   :  { %948 = vrot.lane.b32.xlu0 %v944_v33, %s1844_s1 }
 0x8ad   :  { %v951_v34 = vpop.permute.xlu1 %950 }
 0x8ae   :  { %v953_v36 = vsel %vm148_vm4, %v951_v34, %v939_v28  ;;  %v949_v37 = vpop.permute.xlu0 %948 }
 0x8af   :  { %v955_v38 = vmul.f32 %v953_v36, %v1963_v5  ;;  %v959_v39 = vmul.f32 %v953_v36, %v1923_v16  ;;  %v952_v40 = vsel %vm148_vm4, %v949_v37, %v938_v29 }
 0x8b0   :  { %v954_v41 = vmul.f32 %v952_v40, %v1963_v5  ;;  %v958_v42 = vmul.f32 %v952_v40, %v1923_v16  ;;  %v1428_v5 = vld [vmem:[#allocation5 + $0x108] sm:$0xff] }
 0x8b1   :  { %v1723_v6 = vpack.c.bf16 %v1428_v5, %v1427_v4 }
 0x8b2   :  { %v1755_v43 = vpack.i.bf16 %v959_v39, %v958_v42  ;;  %v1760_v44 = vpack.i.bf16 %v955_v38, %v954_v41 }
 0x8b3   :  { %1724 = vmatpush3.bf16.msra.mxu1 %v1723_v6 }
 0x8b4   :  { %1756 = vrot.lane.b32.xlu0 %v1755_v43, %s1847_s8  ;;  %1761 = vrot.lane.b32.xlu1 %v1760_v44, %s1850_s11 }
 0x8b5   :  { %1725 = vmatprep.subr.bf16.mxu1 %v1852_v3 }
 0x8b7   :  { %1727 = vmatpush3.bf16.msra.mxu1 %v1726_v27 }
 0x8b8   :  { %1233 = vperm.xlu0 %1753, %v1229_v45   ;;  %1238 = vperm.xlu1 %1754, %v1230_v46  }
 0x8bc   :  { %1251 = vperm.xlu0 %1753, %v1247_v48   ;;  %1256 = vperm.xlu1 %1754, %v1248_v49  }
 0x8c0   :  { %1348 = vperm.xlu0 %1753, %v1345_v51  }
 0x926   :  { %v1757_v52 = vpop.permute.xlu0 %1756  ;;  %v1762_v16 = vpop.permute.xlu1 %1761 }
 0x927   :  { %v1759_v53 = vunpack.i.h.bf16 %v1757_v52  ;;  %v1758_v54 = vunpack.i.l.bf16 %v1757_v52  ;;  %v1764_v55 = vunpack.i.h.bf16 %v1762_v16  ;;  %v1763_v56 = vunpack.i.l.bf16 %v1762_v16 }
 0x929   :  { %v1700_v58 = vpack.c.bf16 %v1759_v53, %v1758_v54  ;;  %v1706_v59 = vpack.c.bf16 %v1764_v55, %v1763_v56 }
 0x92b   :  { %1702 = vmatprep.subr.msk.bf16.mxu0 %vm1995_vm10, %v1700_v58 }
 0x92c   :  { %1705 = vmatpush3.bf16.msk.msra.mxu0 %vm1995_vm10, %v1700_v58 }
 0x92d   :  { %1708 = vmatprep.subr.msk.bf16.mxu0 %vm1995_vm10, %v1706_v59 }
 0x92f   :  { %1661 = vmatmul.mubr.msk.f32.vlgmr.msra.gmra.mrb[8].mxu0 %vm967_vm8, %v957_v60 }
 0x930   :  { %1711 = vmatpush3.bf16.msk.msra.mxu0 %vm1995_vm10, %v1706_v59  ;;  %1667 = vmatprep.mubr.msk.f32.mxu0 %vm967_vm8, %v940_v61 }
 0x931   :  { %1714 = vmatprep.subr.msk.bf16.mxu0 %vm1995_vm10, %v1712_v62 }
 0x937   :  { %1668 = vmatmul.mubr.msk.f32.vlgmr.msra.gmra.mrb[8].mxu0 %vm967_vm8, %v941_v63  ;;  %v1239_v8 = vpop.permute.xlu1 %1238  ;;  %v1234_v7 = vpop.permute.xlu0 %1233 }
 0x938   :  { %1717 = vmatpush3.bf16.msk.msra.mxu0 %vm1995_vm10, %v1712_v62  ;;  %1674 = vmatprep.mubr.msk.f32.mxu0 %vm967_vm8, %v1141_v1 }
 0x939   :  { %1718 = vmatprep.subr.bf16.mxu0 %v1852_v3 }
 0x93b   :  { %v1257_v9 = vpop.permute.xlu1 %1256  ;;  %v1252_v11 = vpop.permute.xlu0 %1251 }
 0x93c   :  { %v1337_v15 = vadd.f32 %v1681_v47, %v1257_v9  ;;  %v1332_v18 = vadd.f32 %v1331_v50, %v1252_v11 }
 0x93f   :  { %1675 = vmatmul.mubr.msk.f32.vlgmr.msra.gmra.mrb[8].mxu0 %vm967_vm8, %v1142_v2  ;;  %v1349_v28 = vpop.permute.xlu0 %1348 }
 0x940   :  { %1686 = vmatprep.mubr.msk.f32.mxu0 %vm1842_vm0, %v1841_v0 }
 0xa12   :  { %v1676_v10 = vpop.f32.mrb[8].mxu0 }
 0xa13   :  { %v1242_v12 = vadd.f32 %v1676_v10, %v1239_v8  ;;  %v1218_v13 = vpop.f32.mrb[9].mxu0 }
 0xa14   :  { %v1241_v14 = vadd.f32 %v1234_v7, %v1218_v13 }
 0xa15   :  { %v1244_v17 = vmax.f32 %v1242_v12, 0.0 }
 0xa16   :  { %v1243_v0 = vmax.f32 %v1241_v14, 0.0 }
 0xa17   :  { %v1341_v19 = vadd.f32 %v1337_v15, %v1244_v17 }
 0xa18   :  { %v1340_v20 = vadd.f32 %v1332_v18, %v1243_v0 }
 0xa19   :  { %v1343_v21 = vmax.f32 %v1341_v19, 0.0 }
 0xa1a   :  { %v1342_v22 = vmax.f32 %v1340_v20, 0.0 }
 0xa1c   :  { %v1719_v23 = vpack.c.bf16 %v1343_v21, %v1342_v22 }
 0xa1e   :  { %1721 = vmatpush3.bf16.msk.msra.mxu0 %vm1995_vm10, %v1719_v23 }
 0xa21   :  { %1687 = vmatmul.mubr.msk.f32.vlgmr.msra.gmra.mrb[10].mxu0 %vm967_vm8, %v1344_v24 }
 0xaf4   :  { %v1423_v29 = vpop.f32.mrb[10].mxu0 }
 0xaf5   :  { %v1424_v30 = vadd.f32 %v1423_v29, %v1349_v28  ;;  %v1688_v31 = vpop.f32.mrb[11].mxu0 }
 0xaf7   :  { %1698 = vmatmul.mubr.msk.f32.vlgmr.msra.gmra.mrb[10].mxu1 %vm1436_vm11, %v1424_v30 }
 0xbca   :  { %v1506_v33 = vpop.f32.mrb[10].mxu1 }
 0xbcb   :  { %v1507_v34 = vadd.f32 %v1558_v32, %v1506_v33  ;;  %v1699_v35 = vpop.f32.mrb[11].mxu1 }
 0xbcd   :  { %1511 = vst.msk [vmem:[#allocation7] sm:$0xf] %vm1510_vm12, %v1507_v34 }
 0xbce   :  { %1820 = shalt.err (!%p1817_p6)
}
 0xbcf   :  { %s1821_s17 = scalar_lea.hbm %s2035_s2, 64 }
 0xbd0   :  { %p1822_p7 = scmp.ne.s32.totalorder %s2035_s2, %s1821_s17  ;;  %p1825_p8 = scmp.lt.u32.totalorder %s1821_s17, %s2035_s2 }
 0xbd2   :  { %p1827_p9 = pnand %p1825_p8, %p1822_p7 }
 0xbd4   :  { %1830 = shalt.err (!%p1827_p9)
}
 0xbd5   :  { %1521 = dma.vmem_to_hbm [thread:$0]  %s1519_s13, 64, %s2035_s2, [#allocation4]  }
 0xbd6   :  { %1835 = dma.done.wait [#allocation4], 64  }
 0xbd7   :  { %1836 = vsyncadd [#allocation4], 4294967232 }
 0xbd8   :  { %1525 = vsyncpa [#allocation3], 1 }
 0xbd9   :  { %1526 = vsyncpa [#allocation6], 1 }
 0xbda   :  { %1527 = vsyncpa [#allocation4], 1 }

</bundles_post_ra>
